<compile_context>
chip_gen: v5e
topology: v5e:2x2
jax: 0.10.0
libtpu: 0.0.40
codegen_flags: <defaults>
</compile_context>

<pallas_src>
import functools

import jax
import jax.numpy as jnp
from jax.experimental import pallas as pl
from jax.experimental.pallas import tpu as pltpu


def _gcn_kernel(adj_ref, x_ref, lin_ref, bias_ref, out_ref, *,
                improved, add_self_loops, normalize):
    # adj_ref: (1, N, N)   x_ref: (1, N, F)
    # lin_ref: (F, Cp)     bias_ref: (1, Cp)   out_ref: (1, N, Cp)
    adj = adj_ref[0]                                  # (N, N), input dtype
    n = adj.shape[0]

    if add_self_loops:
        # Diagonal mask from a (N,1) vs (1,N) iota compare (no (N,N) int32 temps).
        row = jax.lax.broadcasted_iota(jnp.int32, (n, 1), 0)
        col = jax.lax.broadcasted_iota(jnp.int32, (1, n), 1)
        fill = jnp.asarray(2.0 if improved else 1.0, adj.dtype)
        adj = jnp.where(row == col, fill, adj)

    # X @ W  (MXU, f32 accumulate; operands stay in their input dtype).
    xw = jnp.dot(x_ref[0], lin_ref[...],
                 preferred_element_type=jnp.float32)  # (N, Cp) f32

    if normalize:
        # Degrees / rsqrt in f32 (exact 1/sqrt for parity with deg**-0.5).
        deg = jnp.sum(adj.astype(jnp.float32), axis=-1, keepdims=True)  # (N, 1)
        deg = jnp.maximum(deg, jnp.float32(1.0))
        dinv = 1.0 / jnp.sqrt(deg)                                      # (N, 1)
        # D^{-1/2} A D^{-1/2} XW  ==  dinv * (A @ (dinv * XW))
        y = (dinv * xw).astype(adj.dtype)             # column scaling on XW
        out = dinv * jnp.dot(adj, y, preferred_element_type=jnp.float32)
    else:
        out = jnp.dot(adj, xw.astype(adj.dtype),
                      preferred_element_type=jnp.float32)

    out = out + bias_ref[...].astype(jnp.float32)     # (1, Cp) broadcast
    out_ref[0] = out.astype(out_ref.dtype)


def dense_gcn_conv(x, adj, lin, bias, mask=None, *,
                   improved=False, add_self_loops=True, normalize=True):
    """Pallas implementation of MyDenseGCNConv.forward."""
    if x.ndim == 2:
        x = x[None]
    if adj.ndim == 2:
        adj = adj[None]
    B, N, F = x.shape
    C = lin.shape[1]

    # Lane-dense output: pad the channel dim up to a multiple of 128.
    Cp = max(128, ((C + 127) // 128) * 128)
    lin_p = jnp.zeros((F, Cp), lin.dtype).at[:, :C].set(lin)
    if bias is None:
        bias_p = jnp.zeros((1, Cp), x.dtype)
    else:
        bias_p = jnp.zeros((1, Cp), bias.dtype).at[:, :C].set(bias)

    # adj is broadcastable in the batch dim (shared adjacency).
    adj_b = adj.shape[0]
    adj_map = (lambda b: (b, 0, 0)) if adj_b == B else (lambda b: (0, 0, 0))

    kernel = functools.partial(_gcn_kernel, improved=improved,
                               add_self_loops=add_self_loops,
                               normalize=normalize)

    out = pl.pallas_call(
        kernel,
        out_shape=jax.ShapeDtypeStruct((B, N, Cp), x.dtype),
        grid_spec=pltpu.PrefetchScalarGridSpec(
            num_scalar_prefetch=0,
            grid=(B,),
            in_specs=[
                pl.BlockSpec((1, N, N), adj_map),
                pl.BlockSpec((1, N, F), lambda b: (b, 0, 0)),
                pl.BlockSpec((F, Cp), lambda b: (0, 0)),
                pl.BlockSpec((1, Cp), lambda b: (0, 0)),
            ],
            out_specs=pl.BlockSpec((1, N, Cp), lambda b: (b, 0, 0)),
        ),
        compiler_params=pltpu.CompilerParams(
            dimension_semantics=("parallel",)),
    )(adj, x, lin_p, bias_p)

    out = out[:, :, :C]
    if mask is not None:
        # Cheap (B,N,1) broadcast multiply done outside the kernel in XLA.
        out = out * mask.reshape(B, N, 1).astype(out.dtype)
    return out


def _reference(x, adj, lin, bias):
    """Pure-JAX reference mirroring the PyTorch forward (mask=None)."""
    B, N, _ = adj.shape
    eye = jnp.eye(N, dtype=bool)
    adj = jnp.where(eye[None], 1.0, adj)
    deg_inv_sqrt = jnp.maximum(adj.sum(-1), 1.0) ** -0.5
    adj = deg_inv_sqrt[..., :, None] * adj * deg_inv_sqrt[..., None, :]
    xw = jnp.einsum("bnf,fc->bnc", x, lin)
    out = jnp.einsum("bnm,bmc->bnc", adj, xw)
    return out + bias


if __name__ == "__main__":
    # Small shapes consistent with the module: B graphs, N nodes,
    # F=in_channels, C=out_channels.
    B, N, F, C = 2, 16, 8, 32

    key = jax.random.PRNGKey(0)
    kx, ka, kw = jax.random.split(key, 3)

    x = jax.random.normal(kx, (B, N, F), dtype=jnp.float32)
    adj = (jax.random.uniform(ka, (B, N, N)) > 0.5).astype(jnp.float32)

    # Deterministic parameter init (init_method='uniform', bias zeros).
    lin = jax.random.uniform(kw, (F, C), dtype=jnp.float32,
                             minval=-1.0, maxval=1.0)
    bias = jnp.zeros((C,), dtype=jnp.float32)

    out = dense_gcn_conv(x, adj, lin, bias)
    out = jax.block_until_ready(out)

    ref = _reference(x, adj, lin, bias)
    assert out.shape == (B, N, C)
    assert jnp.allclose(out, ref, atol=1e-4, rtol=1e-4), "mismatch vs reference"

    print("KERNEL_OK")
</pallas_src>

<mosaic_0001>
module attributes {stable_mosaic.version = 11 : i64} {
  func.func @_gcn_kernel(%arg0: i32, %arg1: memref<1x16x16xf32, #tpu.memory_space<vmem>>, %arg2: memref<1x16x8xf32, #tpu.memory_space<vmem>>, %arg3: memref<8x128xf32, #tpu.memory_space<vmem>>, %arg4: memref<1x128xf32, #tpu.memory_space<vmem>>, %arg5: memref<1x16x128xf32, #tpu.memory_space<vmem>>) attributes {dimension_semantics = [#tpu.dimension_semantics<parallel>], iteration_bounds = array<i64: 2>, scalar_prefetch = 0 : i64, scratch_operands = 0 : i64, tpu.core_type = #tpu.core_type<tc>, window_params = [{transform_indices = @transform_0, window_bounds = array<i64: 1, 16, 16>}, {transform_indices = @transform_1, window_bounds = array<i64: 1, 16, 8>}, {pipeline_mode = #tpu.pipeline_mode<synchronous>, transform_indices = @transform_2, window_bounds = array<i64: 8, 128>}, {pipeline_mode = #tpu.pipeline_mode<synchronous>, transform_indices = @transform_3, window_bounds = array<i64: 1, 128>}, {transform_indices = @transform_4, window_bounds = array<i64: 1, 16, 128>}]} {
    %c0 = arith.constant 0 : index
    %c0_0 = arith.constant 0 : index
    %c0_1 = arith.constant 0 : index
    %0 = vector.load %arg1[%c0, %c0_0, %c0_1] : memref<1x16x16xf32, #tpu.memory_space<vmem>>, vector<1x16x16xf32>
    %1 = vector.shape_cast %0 : vector<1x16x16xf32> to vector<16x16xf32>
    %2 = tpu.iota {dimensions = array<i32: 0>} : vector<16x1xi32>
    %3 = tpu.iota {dimensions = array<i32: 1>} : vector<1x16xi32>
    %4 = vector.broadcast %2 : vector<16x1xi32> to vector<16x16xi32>
    %5 = vector.broadcast %3 : vector<1x16xi32> to vector<16x16xi32>
    %6 = arith.cmpi eq, %4, %5 : vector<16x16xi32>
    %cst = arith.constant 1.000000e+00 : f32
    %7 = vector.broadcast %cst : f32 to vector<16x16xf32>
    %8 = arith.select %6, %7, %1 : vector<16x16xi1>, vector<16x16xf32>
    %c0_2 = arith.constant 0 : index
    %c0_3 = arith.constant 0 : index
    %c0_4 = arith.constant 0 : index
    %9 = vector.load %arg2[%c0_2, %c0_3, %c0_4] : memref<1x16x8xf32, #tpu.memory_space<vmem>>, vector<1x16x8xf32>
    %10 = vector.shape_cast %9 : vector<1x16x8xf32> to vector<16x8xf32>
    %c0_5 = arith.constant 0 : index
    %c0_6 = arith.constant 0 : index
    %11 = vector.load %arg3[%c0_5, %c0_6] : memref<8x128xf32, #tpu.memory_space<vmem>>, vector<8x128xf32>
    %cst_7 = arith.constant dense<0.000000e+00> : vector<16x128xf32>
    %12 = tpu.matmul %10, %11, %cst_7 {dimension_numbers = #tpu.dot_dimension_numbers<[1], [0], [0], [1], [0, 0, 1, 1], [], []>} : vector<16x8xf32>, vector<8x128xf32>, vector<16x128xf32> -> vector<16x128xf32>
    %cst_8 = arith.constant dense<0.000000e+00> : vector<16xf32>
    %13 = vector.multi_reduction <add>, %8, %cst_8 [1] : vector<16x16xf32> to vector<16xf32>
    %14 = vector.shape_cast %13 : vector<16xf32> to vector<16x1xf32>
    %cst_9 = arith.constant 1.000000e+00 : f32
    %15 = vector.broadcast %cst_9 : f32 to vector<16x1xf32>
    %16 = arith.maximumf %14, %15 : vector<16x1xf32>
    %17 = math.sqrt %16 : vector<16x1xf32>
    %cst_10 = arith.constant 1.000000e+00 : f32
    %18 = vector.broadcast %cst_10 : f32 to vector<16x1xf32>
    %19 = arith.divf %18, %17 : vector<16x1xf32>
    %20 = vector.broadcast %19 : vector<16x1xf32> to vector<16x128xf32>
    %21 = arith.mulf %20, %12 : vector<16x128xf32>
    %cst_11 = arith.constant dense<0.000000e+00> : vector<16x128xf32>
    %22 = tpu.matmul %8, %21, %cst_11 {dimension_numbers = #tpu.dot_dimension_numbers<[1], [0], [0], [1], [0, 0, 1, 1], [], []>} : vector<16x16xf32>, vector<16x128xf32>, vector<16x128xf32> -> vector<16x128xf32>
    %23 = vector.broadcast %19 : vector<16x1xf32> to vector<16x128xf32>
    %24 = arith.mulf %23, %22 : vector<16x128xf32>
    %c0_12 = arith.constant 0 : index
    %c0_13 = arith.constant 0 : index
    %25 = vector.load %arg4[%c0_12, %c0_13] : memref<1x128xf32, #tpu.memory_space<vmem>>, vector<1x128xf32>
    %26 = vector.broadcast %25 : vector<1x128xf32> to vector<16x128xf32>
    %27 = arith.addf %24, %26 : vector<16x128xf32>
    %c0_14 = arith.constant 0 : index
    %c0_15 = arith.constant 0 : index
    %c0_16 = arith.constant 0 : index
    %28 = vector.load %arg5[%c0_14, %c0_15, %c0_16] : memref<1x16x128xf32, #tpu.memory_space<vmem>>, vector<1x16x128xf32>
    %29 = vector.shape_cast %28 : vector<1x16x128xf32> to vector<16x128xf32>
    %30 = vector.shape_cast %27 : vector<16x128xf32> to vector<1x16x128xf32>
    tpu.vector_store %arg5[%c0_14, %c0_15, %c0_16], %30 {strides = array<i32>} : memref<1x16x128xf32, #tpu.memory_space<vmem>>, vector<1x16x128xf32>,
    return
  }
  func.func @transform_0(%arg0: i32) -> (i32, i32, i32) {
    %c0_i32 = arith.constant 0 : i32
    %c0_i32_0 = arith.constant 0 : i32
    %c0_i32_1 = arith.constant 0 : i32
    return %arg0, %c0_i32, %c0_i32_0 : i32, i32, i32
  }
  func.func @transform_1(%arg0: i32) -> (i32, i32, i32) {
    %c0_i32 = arith.constant 0 : i32
    %c0_i32_0 = arith.constant 0 : i32
    %c0_i32_1 = arith.constant 0 : i32
    return %arg0, %c0_i32, %c0_i32_0 : i32, i32, i32
  }
  func.func @transform_2(%arg0: i32) -> (i32, i32) {
    %c0_i32 = arith.constant 0 : i32
    %c0_i32_0 = arith.constant 0 : i32
    %c0_i32_1 = arith.constant 0 : i32
    return %c0_i32, %c0_i32_0 : i32, i32
  }
  func.func @transform_3(%arg0: i32) -> (i32, i32) {
    %c0_i32 = arith.constant 0 : i32
    %c0_i32_0 = arith.constant 0 : i32
    %c0_i32_1 = arith.constant 0 : i32
    return %c0_i32, %c0_i32_0 : i32, i32
  }
  func.func @transform_4(%arg0: i32) -> (i32, i32, i32) {
    %c0_i32 = arith.constant 0 : i32
    %c0_i32_0 = arith.constant 0 : i32
    %c0_i32_1 = arith.constant 0 : i32
    return %arg0, %c0_i32, %c0_i32_0 : i32, i32, i32
  }
}

</mosaic_0001>

<bundles_post_ra>
// kernel: tpu_custom_call.1
= control target key start
LH: loop header
LB: loop body
LE: loop exit
PB: predicated region body
PF: predicated region fallthrough
CT: control target
= control target key end

     0   :  { %9 = vsyncpa [#allocation3], 0  ;;  %s725_s0 = inlined_call_operand.vmem [shape: f32[2,16,16], index: 0, kind: input, shape index: {}]   ;;  %s726_s1 = inlined_call_operand.vmem [shape: f32[2,16,8], index: 1, kind: input, shape index: {}]   ;;  %s727_s2 = inlined_call_operand.vmem [shape: f32[8,128], index: 2, kind: input, shape index: {}]   ;;  %s728_s3 = inlined_call_operand.vmem [shape: f32[1,128], index: 3, kind: input, shape index: {}]   ;;  %s729_s4 = inlined_call_operand.hbm [shape: f32[2,16,128], index: 4, kind: output, shape index: {}]  }
   0x1   :  { %11 = vsyncpa [#allocation3 + $0x1], 0  ;;  %s619_s15 = smov 0   ;;  %s621_s16 = smov 0  }
   0x2   :  { %s623_s17 = smov 0   ;;  %s625_s18 = smov 0  }
   0x3 LB: > { %s640_s19 = sadd.s32 4294967295, %s590_s18   ;;  %s454_s20 = sadd.s32 4294967294, %s590_s18   ;;  %s590_s18 = sphi %s625_s18, %s735_s18   ;;  %s586_s17 = sphi %s623_s17, %s734_s17   ;;  %s582_s16 = sphi %s621_s16, %s733_s16   ;;  %s578_s15 = sphi %s619_s15, %s732_s15  }
   0x4   : > { %s644_s21 = sadd.s32 1, %s590_s18   ;;  %s118_s22 = sadd.s32 1, %s586_s17 }
   0x5   : > { %s115_s23 = ssub.s32 %s590_s18, %s644_s21  ;;  %p128_p0 = scmp.ne.s32.totalorder %s586_s17, %s582_s16 }
   0x6   : > { %p116_p1 = scmp.eq.s32.totalorder %s115_s23, 0  ;;  %p129_p2 = scmp.eq.s32.totalorder %s640_s19, 1 }
   0x7   : > { %p134_p3 = scmp.ne.s32.totalorder %s582_s16, %s578_s15  ;;  %p135_p4 = scmp.eq.s32.totalorder %s454_s20, 1 }
   0x8   : > { %s655_s24 = scalar_select %p116_p1, %s586_s17, %s118_s22  }
   0x9   : > { %p657_p5 = por %p129_p2, %p128_p0  ;;  %p661_p6 = por %p135_p4, %p134_p3 }
   0xa   : > { %p457_p7 = scmp.ge.s32.totalorder %s590_s18, 1  ;;  %p175_p8 = scmp.lt.s32.totalorder %s590_s18, 3 }
   0xc   : > { %p176_p9 = pnand %p457_p7, %p175_p8 }
   0xd   : > { %p206_p10 = scmp.lt.s32.totalorder (!%p176_p9), %s640_s19, 1  ;;  %s203_s11 = sand.u32 (!%p176_p9), 1, %s582_s16  }
   0xe   : > { %179 = sbr.rel (%p176_p9) target bundleno = 335 (0x14f), region = 36  ;;  %s458_s12 = sshll.u32 (!%p176_p9), %s203_s11, 4 }
   0xf   : > { %s474_s20 = sshll.u32 (!%p176_p9), %s640_s19, 4  ;;  %s205_s28 = scalar_lea.vmem (!%p176_p9), [#allocation2], %s458_s12 }
  0x10   : > { %s376_s27 = scalar_lea.hbm (!%p176_p9), %s729_s4, %s474_s20  ;;  %s365_s5 = scalar_lea.sflag (!%p176_p9), [#allocation3], %s203_s11 }
  0x11   : > { %s548_s9 = scalar_lea.hbm (!%p176_p9), %s729_s4, 32 }
  0x13   : > { %v218_v0 = vlaneseq  ;;  %v229_v1 = vld [vmem:[%s727_s2] sm:$0xff]  ;;  %s207_s29 = scalar_select %p206_p10, %s640_s19, 1  ;;  %vm230_vm0 = vcmask 64512   ;;  %vm260_vm1 = vcmask 130048  }
  0x14   : > { %475 = vmatpush.msra.mxu3 %v229_v1  ;;  %252 = vmatpush.msra.mxu0 %v229_v1  ;;  %v519_v61 = vld [vmem:[%s728_s3] ss:$0 sm:$0xff] }
  0x15   : > { %v219_v2 = vshrl.u32 %v218_v0, 7  ;;  %v222_v3 = vand.u32 127, %v218_v0  ;;  %s472_s30 = sshll.u32 %s207_s29, 4  ;;  %s377_s29 = sshll.u32 %s205_s28, 4  ;;  %s378_s29 = int_to_ptr.vmem [resolvable:$true] %s377_s29 }
  0x16   : > { %s210_s7 = scalar_lea.vmem %s725_s0, %s472_s30  ;;  %s215_s10 = scalar_lea.vmem %s726_s1, %s472_s30 }
  0x17   : > { %v220_v4 = vadd.s32 8, %v219_v2  ;;  %v217_v5 = vld [vmem:[%s210_s7 + $0x8] sm:$0xff]  ;;  %v227_v8 = vld [vmem:[%s215_s10] sm:$0xff]  ;;  %vm223_vm3 = vcmp.eq.s32.totalorder %v219_v2, %v222_v3  ;;  %s379_s30 = sshll.u32 %s376_s27, 4  ;;  %s380_s30 = int_to_ptr.hbm [resolvable:$true] %s379_s30 }
  0x18   : > { %v228_v6 = vld [vmem:[%s215_s10 + $0x8] sm:$0xff]  ;;  %v216_v10 = vld [vmem:[%s210_s7] sm:$0xff]  ;;  %463 = vmatmul.msk.f32.vlgmr.msra.gmra.mxu0 %vm230_vm0, %v227_v8  ;;  %s542_s6 = sshra.s32 %s380_s30, 4  ;;  %s543_s6 = int_to_ptr.hbm [resolvable:$true] %s542_s6 }
  0x19   : > { %vm224_vm2 = vcmp.eq.s32.totalorder %v220_v4, %v222_v3  ;;  %464 = vmatmul.msk.f32.vlgmr.msra.gmra.mxu3 %vm230_vm0, %v228_v6  ;;  %v682_v11 = vsel %vm223_vm3, 1.0, %v216_v10  ;;  %s544_s19 = scalar_lea.hbm %s543_s6, 16  ;;  %p549_p0 = scmp.lt.s32.totalorder %s543_s6, %s729_s4 }
  0x1a   : > { %v678_v7 = vsel %vm224_vm2, 1.0, %v217_v5  ;;  %v261_v12 = vsel %vm260_vm1, %v682_v11, 0.0  ;;  %p545_p11 = scmp.ne.s32.totalorder %s543_s6, %s544_s19  ;;  %p550_p1 = scmp.lt.s32.totalorder %s548_s9, %s544_s19 }
  0x1b   : > { %v264_v9 = vsel %vm260_vm1, %v678_v7, 0.0 }
  0x1c   : > { %265 = vadd.xlane.f32.xlu0 %v264_v9  ;;  %p546_p12 = pnand %p545_p11, %p657_p5  ;;  %p551_p2 = por %p550_p1, %p549_p0 }
  0x1e   : > { %p547_p13 = pneg %p546_p12 }
  0x20   : > { %p552_p3 = pnand %p551_p2, %p547_p13 }
  0x24   : > { %262 = vadd.xlane.f32.xlu0 %v261_v12 }
  0x8f   : > { %v266_v13 = vpop.xlane.xlu0 %265 }
  0x90   : > { %v268_v14 = vmax.f32 %v266_v13, 1.0 }
  0x92   : > { %520 = vrsqrt.f32 %v268_v14  ;;  %vm288_vm4 = vcmp.eq.f32.partialorder %v268_v14, inf  ;;  %v291_v27 = vand.u32 2147483648, %v268_v14  ;;  %vm290_vm5 = vcmp.eq.f32.partialorder %v268_v14, 0.0 }
  0x95   : > { %v254_v56 = vpop.f32.mrf.mxu0 }
  0x97   : > { %v263_v15 = vpop.xlane.xlu0 %262 }
  0x98   : > { %v521_v16 = vpop.eup %520  ;;  %v267_v17 = vmax.f32 %v263_v15, 1.0 }
  0x99   : > { %v282_v18 = vmul.f32 %v521_v16, %v268_v14 }
  0x9a   : > { %522 = vrsqrt.f32 %v267_v17  ;;  %vm276_vm6 = vcmp.eq.f32.partialorder %v267_v17, inf  ;;  %v279_v35 = vand.u32 2147483648, %v267_v17  ;;  %vm278_vm7 = vcmp.eq.f32.partialorder %v267_v17, 0.0 }
  0x9b   : > { %v283_v19 = vmul.f32 %v521_v16, %v282_v18 }
  0x9c   : > { %v257_v44 = vpop.f32.mrf.mxu3 }
  0x9d   : > { %v284_v20 = vmul.f32 0.5, %v283_v19 }
  0x9f   : > { %v285_v21 = vsub.f32 1.5, %v284_v20 }
  0xa0   : > { %v523_v22 = vpop.eup %522 }
  0xa1   : > { %v286_v23 = vmul.f32 %v521_v16, %v285_v21  ;;  %v270_v24 = vmul.f32 %v523_v22, %v267_v17 }
  0xa3   : > { %v287_v25 = vmul.f32 %v286_v23, %v268_v14  ;;  %v271_v26 = vmul.f32 %v523_v22, %v270_v24 }
  0xa5   : > { %v289_v28 = vsel %vm288_vm4, %v268_v14, %v287_v25  ;;  %v272_v29 = vmul.f32 0.5, %v271_v26 }
  0xa6   : > { %v292_v30 = vsel %vm290_vm5, %v291_v27, %v289_v28 }
  0xa7   : > { %524 = vrcp.f32 %v292_v30  ;;  %v273_v31 = vsub.f32 1.5, %v272_v29  ;;  %v319_v40 = vand.u32 2147483648, %v292_v30  ;;  %v317_v42 = vand.u32 2147483647, %v292_v30 }
  0xa8   : > { %vm313_vm9 = vweird.f32 %v292_v30 }
  0xa9   : > { %v274_v32 = vmul.f32 %v523_v22, %v273_v31  ;;  %v320_v45 = vor.u32 1.1754944e-38, %v319_v40  ;;  %vm318_vm11 = vcmp.eq.f32.partialorder %v317_v42, 8.507059e+37 }
  0xab   : > { %v275_v33 = vmul.f32 %v274_v32, %v267_v17 }
  0xad   : > { %v525_v34 = vpop.eup %524  ;;  %v277_v37 = vsel %vm276_vm6, %v267_v17, %v275_v33 }
  0xae   : > { %v309_v36 = vmul.f32 %v525_v34, %v292_v30  ;;  %v280_v38 = vsel %vm278_vm7, %v279_v35, %v277_v37  ;;  %vm314_vm8 = vweird.f32 %v525_v34 }
  0xaf   : > { %526 = vrcp.f32 %v280_v38  ;;  %vm315_vm10 = vmor %vm313_vm9, %vm314_vm8  ;;  %v304_v52 = vand.u32 2147483648, %v280_v38  ;;  %v302_v54 = vand.u32 2147483647, %v280_v38  ;;  %vm298_vm13 = vweird.f32 %v280_v38 }
  0xb0   : > { %v310_v39 = vsub.f32 1.0, %v309_v36 }
  0xb1   : > { %v305_v57 = vor.u32 1.1754944e-38, %v304_v52  ;;  %vm303_vm15 = vcmp.eq.f32.partialorder %v302_v54, 8.507059e+37 }
  0xb2   : > { %v311_v41 = vmul.f32 %v525_v34, %v310_v39 }
  0xb4   : > { %v312_v43 = vadd.f32 %v525_v34, %v311_v41 }
  0xb5   : > { %v527_v46 = vpop.eup %526 }
  0xb6   : > { %v316_v47 = vsel %vm315_vm10, %v525_v34, %v312_v43  ;;  %v294_v49 = vmul.f32 %v527_v46, %v280_v38  ;;  %vm299_vm12 = vweird.f32 %v527_v46 }
  0xb7   : > { %v321_v48 = vsel %vm318_vm11, %v320_v45, %v316_v47  ;;  %vm300_vm14 = vmor %vm298_vm13, %vm299_vm12 }
  0xb8   : > { %v324_v50 = vmul.f32 %v321_v48, %v257_v44  ;;  %v295_v51 = vsub.f32 1.0, %v294_v49 }
  0xba   : > { %345 = vmatpush.msra.mxu1 %v324_v50  ;;  %476 = vmatpush.msra.mxu2 %v324_v50  ;;  %v296_v53 = vmul.f32 %v527_v46, %v295_v51 }
  0xbc   : > { %v297_v55 = vadd.f32 %v527_v46, %v296_v53 }
  0xbe   : > { %v301_v58 = vsel %vm300_vm14, %v527_v46, %v297_v55 }
  0xbf   : > { %v306_v59 = vsel %vm303_vm15, %v305_v57, %v301_v58 }
  0xc0   : > { %v323_v60 = vmul.f32 %v306_v59, %v254_v56 }
  0xc2   : > { %346 = vmatpush.msra.mxu1 %v323_v60  ;;  %477 = vmatpush.msra.mxu2 %v323_v60 }
  0xc3   : > { %465 = vmatmul.msk.f32.vlgmr.msra.gmra.mxu1 %vm260_vm1, %v682_v11  ;;  %466 = vmatmul.msk.f32.vlgmr.msra.gmra.mxu2 %vm260_vm1, %v678_v7 }
 0x140   : > { %v348_v62 = vpop.f32.mrf.mxu1 }
 0x141   : > { %v354_v63 = vmul.f32 %v348_v62, %v306_v59 }
 0x143   : > { %v360_v0 = vadd.f32 %v519_v61, %v354_v63 }
 0x145   : > { %362 = vst [vmem:[%s205_s28] sm:$0xff] %v360_v0 }
 0x146   : > { %v351_v1 = vpop.f32.mrf.mxu2 }
 0x147   : > { %v355_v2 = vmul.f32 %v351_v1, %v321_v48 }
 0x149   : > { %v361_v3 = vadd.f32 %v519_v61, %v355_v2 }
 0x14b   : > { %363 = vst [vmem:[%s205_s28 + $0x8] sm:$0xff] %v361_v3 }
 0x14c   : > { %555 = shalt.err (!%p552_p3)
}
 0x14d   : > { %s592_s11 = smov 128   ;;  %s593_s13 = smov 8  }
 0x14e   : > { %478 = dma.vmem_to_hbm [thread:$0]  (%p657_p5), %s378_s29, 256, %s380_s30, %s365_s5, %s592_s11, %s592_s11, %s593_s13  }
 0x14f PF: > { %p484_p4 = scmp.ge.s32.totalorder %s590_s18, 2  ;;  %s394_s14 = sand.u32 1, %s578_s15  }
 0x150   : > { %s395_s20 = scalar_lea.sflag [#allocation3], %s394_s14 }
 0x151   : > { %p481_p7 = pnand %p484_p4, %p661_p6 }
 0x153   : > { %p482_p8 = pneg %p481_p7 }
 0x155   : > { %573 = dma.done.wait (%p482_p8), %s395_s20, 256  }
 0x156   : > { %575 = vsyncadd (%p482_p8), %s395_s20, 4294967040  ;;  %p14_p9 = scmp.ge.s32.totalorder %s644_s21, 4   ;;  %s732_s15 = smov %s582_s16 }
 0x157   : > { %s733_s16 = smov %s586_s17  ;;  %s734_s17 = smov %s655_s24 }
 0x158   : > { %s735_s18 = smov %s644_s21  ;;  %16 = sbr.rel (!%p14_p9) target bundleno = 3 (0x3), region = 74 }
 0x15d   :  { %401 = vsyncpa [#allocation3], 1 }
 0x15e   :  { %403 = vsyncpa [#allocation3 + $0x1], 1 }

</bundles_post_ra>
